<compile_context>
chip_gen: v7x
topology: tpu7x:2x2x1
jax: 0.10.0
libtpu: 0.0.40
codegen_flags: <defaults>
</compile_context>

<pallas_src>
import jax
import jax.numpy as jnp
from jax.experimental import pallas as pl
from jax.experimental.pallas import tpu as pltpu


# ---------------------------------------------------------------------------
# Kernel
# ---------------------------------------------------------------------------
def _gate_fusion_kernel(feat_ref, gate_ref, out_ref):
    # feat_ref: (num_features, tb, tD) VMEM
    # gate_ref: (num_features, tD)     VMEM (resident across the inner batch axis)
    # out_ref : (tb, tD)               VMEM
    num_features = feat_ref.shape[0]

    # Sigmoid on the tiny gates tile (EUP slot; F*tD elements only).
    g = jax.nn.sigmoid(gate_ref[...].astype(jnp.float32))        # (F, tD)

    # Explicit per-feature accumulation in f32: never materializes an
    # (F, tb, tD) f32 intermediate, only one (tb, tD) accumulator is live.
    acc = feat_ref[0].astype(jnp.float32) * g[0:1, :]
    for f in range(1, num_features):
        acc = acc + feat_ref[f].astype(jnp.float32) * g[f:f + 1, :]

    # Divide after the sum (matches the PyTorch module's rounding order).
    out_ref[...] = (acc * (1.0 / num_features)).astype(out_ref.dtype)


# ---------------------------------------------------------------------------
# Tile selection
# ---------------------------------------------------------------------------
_MIN_GRID_STEPS = 4  # enough steps to pipeline DMA and feed both v7x TensorCores


def _round_up(x, m):
    return ((x + m - 1) // m) * m


def _sublane(dtype):
    return {4: 8, 2: 16, 1: 32}.get(jnp.dtype(dtype).itemsize, 8)


def _target_block_bytes():
    """Generation-aware per-step byte budget (features block + output block)."""
    try:
        info = pltpu.get_tpu_info()
        vmem = int(getattr(info, "vmem_capacity_bytes", 128 << 20))
    except Exception:
        vmem = 128 << 20
    if vmem <= (64 << 20):
        # v7x-class: 64 MiB physical VMEM but ~3.2 TB/s HBM. Bigger steps keep
        # the ~0.35us/step overhead negligible; 2x10 MiB (+gates) stays under
        # the 32 MiB default scoped VMEM.
        return 10 << 20
    # v5e/v6e: 4 MiB/step is already ~3-5us of DMA; 2x4 MiB fits v5e's 16 MiB
    # default scoped VMEM.
    return 4 << 20


def _select_tiles(num_features, batch, input_dim, dtype, budget):
    """Pick (tb, tD). Budget counts one step's streamed bytes: F feature rows
    plus 1 output row (each double-buffered by Pallas)."""
    bpe = jnp.dtype(dtype).itemsize
    sub = _sublane(dtype)
    rows = num_features + 1

    def step_bytes(tb_, td_):
        return rows * tb_ * td_ * bpe

    # Tiny problem: one block / one grid step, no padding needed.
    if step_bytes(batch, input_dim) <= budget:
        return batch, input_dim

    # Lane axis: multiple of 128; shrink only if a minimal (sublane-high) slab
    # of all features still exceeds the budget. Floor contiguous DMA runs at
    # ~2 KiB so strided copies stay efficient.
    pD = _round_up(input_dim, 128)
    floor_tD = min(pD, _round_up(max(1, 2048 // bpe), 128))
    tD = pD
    while tD > floor_tD and step_bytes(sub, tD) > budget:
        tD = max(floor_tD, _round_up(tD // 2, 128))

    # Sublane axis: largest multiple of `sub` that fits the budget.
    max_tb = max(sub, (budget // (rows * tD * bpe)) // sub * sub)
    tb = min(_round_up(batch, sub), max_tb)

    def steps(tb_, td_):
        return (_round_up(batch, tb_) // tb_) * (_round_up(input_dim, td_) // td_)

    # Enough steps for DMA/compute overlap and dual-TC sharding.
    while steps(tb, tD) < _MIN_GRID_STEPS and tb > sub:
        tb = max(sub, _round_up(tb // 2, sub))
    # Prefer an even total step count so the v7x megacore split is balanced.
    if steps(tb, tD) > 1 and steps(tb, tD) % 2 == 1 and tb >= 2 * sub:
        tb = max(sub, _round_up(tb // 2, sub))

    return tb, tD


# ---------------------------------------------------------------------------
# Wrapper
# ---------------------------------------------------------------------------
def gate_feature_fusion(features_stacked, gates, *, tb=None, tD=None):
    """features_stacked: (num_features, batch, input_dim); gates: (num_features, input_dim)."""
    num_features, batch, input_dim = features_stacked.shape
    assert gates.shape == (num_features, input_dim)
    dtype = features_stacked.dtype
    bpe = jnp.dtype(dtype).itemsize
    sub = _sublane(dtype)

    budget = _target_block_bytes()
    auto_tb, auto_tD = _select_tiles(num_features, batch, input_dim, dtype, budget)
    tb = auto_tb if tb is None else tb
    tD = auto_tD if tD is None else tD

    # Pad (only when needed) so blocks are always (sublane, lane)-aligned:
    # lane-dense output stores, and no giant untileable block can blow VMEM.
    pB = _round_up(batch, tb)
    pD = _round_up(input_dim, tD)

    assert pB % tb == 0 and pD % tD == 0
    assert tb == pB or tb % sub == 0, (
        f"tb must be a multiple of {sub} (sublane for this dtype) or cover the full batch")
    assert tD == pD or tD % 128 == 0, (
        "tD must be a multiple of 128 (lane) or cover the full input_dim")

    feats = features_stacked
    gts = gates
    if (pB, pD) != (batch, input_dim):
        feats = jnp.pad(features_stacked,
                        ((0, 0), (0, pB - batch), (0, pD - input_dim)))
        gts = jnp.pad(gates, ((0, 0), (0, pD - input_dim)))

    grid = (pD // tD, pB // tb)  # batch innermost -> gates tile stays resident

    # Scoped-VMEM need: double-buffered (features + output) step + gates tile.
    needed = (2 * (num_features + 1) * tb * tD * bpe
              + 2 * num_features * tD * jnp.dtype(gts.dtype).itemsize)
    vmem_limit = (needed + (2 << 20)) if needed > (16 << 20) else None

    out = pl.pallas_call(
        _gate_fusion_kernel,
        out_shape=jax.ShapeDtypeStruct((pB, pD), dtype),
        grid_spec=pltpu.PrefetchScalarGridSpec(
            num_scalar_prefetch=0,
            grid=grid,
            in_specs=[
                # Features: stream an (F, tb, tD) slab per step (double-buffered).
                pl.BlockSpec((num_features, tb, tD), lambda j, i: (0, i, j)),
                # Gates: tiny tile; constant block index across the inner (batch)
                # axis so it is not re-fetched every step.
                pl.BlockSpec((num_features, tD), lambda j, i: (0, j)),
            ],
            out_specs=pl.BlockSpec((tb, tD), lambda j, i: (i, j)),
        ),
        compiler_params=pltpu.CompilerParams(
            dimension_semantics=("parallel", "parallel"),
            vmem_limit_bytes=vmem_limit,
        ),
    )(feats, gts)

    if (pB, pD) != (batch, input_dim):
        out = out[:batch, :input_dim]
    return out


# ---------------------------------------------------------------------------
# Reference + tests
# ---------------------------------------------------------------------------
def _reference(features_stacked, gates):
    g = jax.nn.sigmoid(gates.astype(jnp.float32))
    gated = features_stacked.astype(jnp.float32) * g[:, None, :]
    return (jnp.sum(gated, axis=0) / features_stacked.shape[0]).astype(
        features_stacked.dtype)


if __name__ == "__main__":
    # TODO(synk): self.fc (nn.Linear) and dropout_value are defined in __init__
    # but unused in forward, so they are intentionally not implemented here.
    key = jax.random.PRNGKey(0)
    k1, k2, k3, k4, k5, k6, k7, k8 = jax.random.split(key, 8)

    # --- Test 1: toy shapes from the module (single-block fast path) ---------
    nf, b, d = 4, 8, 128
    feats1 = jax.random.normal(k1, (nf, b, d), dtype=jnp.float32)
    gates1 = jax.random.uniform(k2, (nf, d), dtype=jnp.float32)
    out1 = jax.block_until_ready(gate_feature_fusion(feats1, gates1))
    ref1 = _reference(feats1, gates1)
    assert out1.shape == (b, d)
    assert jnp.allclose(out1, ref1, atol=1e-5, rtol=1e-5), "mismatch (small)"

    # --- Test 2: tiled 2D-grid path with explicit small tiles ----------------
    nf2, b2, d2 = 4, 32, 256
    feats2 = jax.random.normal(k3, (nf2, b2, d2), dtype=jnp.float32)
    gates2 = jax.random.uniform(k4, (nf2, d2), dtype=jnp.float32)
    out2 = jax.block_until_ready(gate_feature_fusion(feats2, gates2, tb=8, tD=128))
    ref2 = _reference(feats2, gates2)
    assert out2.shape == (b2, d2)
    assert jnp.allclose(out2, ref2, atol=1e-5, rtol=1e-5), "mismatch (tiled)"

    # --- Test 3: non-aligned batch / input_dim -> padding + slicing path -----
    nf3, b3, d3 = 3, 20, 200
    feats3 = jax.random.normal(k5, (nf3, b3, d3), dtype=jnp.float32)
    gates3 = jax.random.uniform(k6, (nf3, d3), dtype=jnp.float32)
    out3 = jax.block_until_ready(gate_feature_fusion(feats3, gates3, tb=8, tD=128))
    ref3 = _reference(feats3, gates3)
    assert out3.shape == (b3, d3)
    assert jnp.allclose(out3, ref3, atol=1e-5, rtol=1e-5), "mismatch (padded)"

    # --- Test 4: bf16 inputs (per-feature f32 accumulation path) -------------
    nf4, b4, d4 = 4, 32, 256
    feats4 = jax.random.normal(k7, (nf4, b4, d4), dtype=jnp.bfloat16)
    gates4 = jax.random.uniform(k8, (nf4, d4), dtype=jnp.bfloat16)
    out4 = jax.block_until_ready(gate_feature_fusion(feats4, gates4, tb=16, tD=128))
    ref4 = _reference(feats4, gates4)
    assert out4.shape == (b4, d4)
    assert jnp.allclose(out4.astype(jnp.float32), ref4.astype(jnp.float32),
                        atol=2e-2, rtol=2e-2), "mismatch (bf16)"

    print("KERNEL_OK")
</pallas_src>

<mosaic_0001>
module attributes {stable_mosaic.version = 11 : i64} {
  func.func @_gate_fusion_kernel(%arg0: i32, %arg1: i32, %arg2: memref<4x8x128xf32, #tpu.memory_space<vmem>>, %arg3: memref<4x128xf32, #tpu.memory_space<vmem>>, %arg4: memref<8x128xf32, #tpu.memory_space<vmem>>) attributes {dimension_semantics = [#tpu.dimension_semantics<parallel>, #tpu.dimension_semantics<parallel>], iteration_bounds = array<i64: 1, 1>, scalar_prefetch = 0 : i64, scratch_operands = 0 : i64, tpu.core_type = #tpu.core_type<tc>, window_params = [{transform_indices = @transform_0, window_bounds = array<i64: 4, 8, 128>}, {transform_indices = @transform_1, window_bounds = array<i64: 4, 128>}, {transform_indices = @transform_2, window_bounds = array<i64: 8, 128>}]} {
    %c0 = arith.constant 0 : index
    %c0_0 = arith.constant 0 : index
    %0 = vector.load %arg3[%c0, %c0_0] : memref<4x128xf32, #tpu.memory_space<vmem>>, vector<4x128xf32>
    %1 = arith.negf %0 : vector<4x128xf32>
    %2 = math.exp %1 : vector<4x128xf32>
    %cst = arith.constant 1.000000e+00 : f32
    %3 = vector.broadcast %cst : f32 to vector<4x128xf32>
    %4 = arith.addf %3, %2 : vector<4x128xf32>
    %5 = arith.divf %3, %4 : vector<4x128xf32>
    %c0_1 = arith.constant 0 : index
    %c0_2 = arith.constant 0 : index
    %c0_3 = arith.constant 0 : index
    %6 = vector.load %arg2[%c0_1, %c0_2, %c0_3] : memref<4x8x128xf32, #tpu.memory_space<vmem>>, vector<1x8x128xf32>
    %7 = vector.shape_cast %6 : vector<1x8x128xf32> to vector<8x128xf32>
    %8 = vector.extract_strided_slice %5 {offsets = [0, 0], sizes = [1, 128], strides = [1, 1]} : vector<4x128xf32> to vector<1x128xf32>
    %9 = vector.broadcast %8 : vector<1x128xf32> to vector<8x128xf32>
    %10 = arith.mulf %7, %9 : vector<8x128xf32>
    %c1 = arith.constant 1 : index
    %c0_4 = arith.constant 0 : index
    %c0_5 = arith.constant 0 : index
    %11 = vector.load %arg2[%c1, %c0_4, %c0_5] : memref<4x8x128xf32, #tpu.memory_space<vmem>>, vector<1x8x128xf32>
    %12 = vector.shape_cast %11 : vector<1x8x128xf32> to vector<8x128xf32>
    %13 = vector.extract_strided_slice %5 {offsets = [1, 0], sizes = [1, 128], strides = [1, 1]} : vector<4x128xf32> to vector<1x128xf32>
    %14 = vector.broadcast %13 : vector<1x128xf32> to vector<8x128xf32>
    %15 = arith.mulf %12, %14 : vector<8x128xf32>
    %16 = arith.addf %10, %15 : vector<8x128xf32>
    %c2 = arith.constant 2 : index
    %c0_6 = arith.constant 0 : index
    %c0_7 = arith.constant 0 : index
    %17 = vector.load %arg2[%c2, %c0_6, %c0_7] : memref<4x8x128xf32, #tpu.memory_space<vmem>>, vector<1x8x128xf32>
    %18 = vector.shape_cast %17 : vector<1x8x128xf32> to vector<8x128xf32>
    %19 = vector.extract_strided_slice %5 {offsets = [2, 0], sizes = [1, 128], strides = [1, 1]} : vector<4x128xf32> to vector<1x128xf32>
    %20 = vector.broadcast %19 : vector<1x128xf32> to vector<8x128xf32>
    %21 = arith.mulf %18, %20 : vector<8x128xf32>
    %22 = arith.addf %16, %21 : vector<8x128xf32>
    %c3 = arith.constant 3 : index
    %c0_8 = arith.constant 0 : index
    %c0_9 = arith.constant 0 : index
    %23 = vector.load %arg2[%c3, %c0_8, %c0_9] : memref<4x8x128xf32, #tpu.memory_space<vmem>>, vector<1x8x128xf32>
    %24 = vector.shape_cast %23 : vector<1x8x128xf32> to vector<8x128xf32>
    %25 = vector.extract_strided_slice %5 {offsets = [3, 0], sizes = [1, 128], strides = [1, 1]} : vector<4x128xf32> to vector<1x128xf32>
    %26 = vector.broadcast %25 : vector<1x128xf32> to vector<8x128xf32>
    %27 = arith.mulf %24, %26 : vector<8x128xf32>
    %28 = arith.addf %22, %27 : vector<8x128xf32>
    %cst_10 = arith.constant 2.500000e-01 : f32
    %29 = vector.broadcast %cst_10 : f32 to vector<8x128xf32>
    %30 = arith.mulf %28, %29 : vector<8x128xf32>
    %c0_11 = arith.constant 0 : index
    %c0_12 = arith.constant 0 : index
    %31 = vector.load %arg4[%c0_11, %c0_12] : memref<8x128xf32, #tpu.memory_space<vmem>>, vector<8x128xf32>
    tpu.vector_store %arg4[%c0_11, %c0_12], %30 {strides = array<i32>} : memref<8x128xf32, #tpu.memory_space<vmem>>, vector<8x128xf32>,
    return
  }
  func.func @transform_0(%arg0: i32, %arg1: i32) -> (i32, i32, i32) {
    %c0_i32 = arith.constant 0 : i32
    %c0_i32_0 = arith.constant 0 : i32
    return %c0_i32, %arg1, %arg0 : i32, i32, i32
  }
  func.func @transform_1(%arg0: i32, %arg1: i32) -> (i32, i32) {
    %c0_i32 = arith.constant 0 : i32
    %c0_i32_0 = arith.constant 0 : i32
    return %c0_i32, %arg0 : i32, i32
  }
  func.func @transform_2(%arg0: i32, %arg1: i32) -> (i32, i32) {
    %c0_i32 = arith.constant 0 : i32
    return %arg1, %arg0 : i32, i32
  }
}

</mosaic_0001>

<bundles_post_ra>
// kernel: tpu_custom_call.1
= control target key start
LH: loop header
LB: loop body
LE: loop exit
PB: predicated region body
PF: predicated region fallthrough
CT: control target
= control target key end

     0   :  { %7 = vsyncpa [#allocation3], 0  ;;  %s231_s0 = inlined_call_operand.hbm [shape: f32[4,8,128], index: 0, kind: input, shape index: {}]   ;;  %s232_s1 = inlined_call_operand.hbm [shape: f32[4,128], index: 1, kind: input, shape index: {}]   ;;  %s233_s2 = inlined_call_operand.hbm [shape: f32[8,128], index: 2, kind: output, shape index: {}]  }
   0x1   :  { %8 = vsyncpa [#allocation6], 0 }
   0x2   :  { %9 = vsyncpa [#allocation4], 0  ;;  %s175_s9 = smov [#allocation2]   ;;  %s103_s13 = scalar_lea.hbm %s231_s0, 512 }
   0x3   :  { %s15_s10 = sshll.u32 %s175_s9, 4  ;;  %p104_p0 = scmp.ne.s32.totalorder %s231_s0, %s103_s13  ;;  %s16_s10 = int_to_ptr.vmem [resolvable:$true] %s15_s10 }
   0x4   :  { %p107_p1 = scmp.lt.u32.totalorder %s103_s13, %s231_s0 }
   0x6   :  { %p109_p2 = pnand %p107_p1, %p104_p0 }
   0x8   :  { %112 = shalt.err (!%p109_p2)
}
   0x9   :  { %s113_s18 = scalar_lea.vmem %s16_s10, 512  ;;  %p118_p4 = scmp.lt.s32.totalorder %s16_s10, %s16_s10 }
   0xa   :  { %p114_p3 = scmp.ne.s32.totalorder %s16_s10, %s113_s18  ;;  %p119_p5 = scmp.lt.s32.totalorder %s113_s18, %s113_s18 }
   0xc   :  { %p120_p6 = por %p119_p5, %p118_p4 }
   0xe   :  { %p121_p7 = pnand %p120_p6, %p114_p3 }
  0x10   :  { %124 = shalt.err (!%p121_p7)
}
  0x11   :  { %s176_s19 = smov 128   ;;  %s177_s20 = smov 8  }
  0x12   :  { %21 = dma.hbm_to_vmem [thread:$0]  %s231_s0, 512, %s16_s10, [#allocation3], %s176_s19, %s176_s19, %s177_s20  }
  0x13   :  { %s178_s23 = smov [#allocation5]   ;;  %s125_s27 = scalar_lea.hbm %s232_s1, 64 }
  0x14   :  { %s28_s24 = sshll.u32 %s178_s23, 4  ;;  %p126_p8 = scmp.ne.s32.totalorder %s232_s1, %s125_s27  ;;  %s29_s24 = int_to_ptr.vmem [resolvable:$true] %s28_s24 }
  0x15   :  { %p129_p9 = scmp.lt.u32.totalorder %s125_s27, %s232_s1 }
  0x17   :  { %p131_p10 = pnand %p129_p9, %p126_p8 }
  0x19   :  { %134 = shalt.err (!%p131_p10)
}
  0x1a   :  { %s135_s4 = scalar_lea.vmem %s29_s24, 64  ;;  %p140_p12 = scmp.lt.s32.totalorder %s29_s24, %s29_s24 }
  0x1b   :  { %p136_p11 = scmp.ne.s32.totalorder %s29_s24, %s135_s4  ;;  %p141_p13 = scmp.lt.s32.totalorder %s135_s4, %s135_s4 }
  0x1d   :  { %p142_p0 = por %p141_p13, %p140_p12 }
  0x1f   :  { %p143_p1 = pnand %p142_p0, %p136_p11 }
  0x21   :  { %146 = shalt.err (!%p143_p1)
}
  0x22   :  { %31 = dma.hbm_to_vmem [thread:$0]  %s232_s1, 64, %s29_s24, [#allocation6]  }
  0x23   :  { %169 = dma.done.wait [#allocation3], 512  }
  0x24   :  { %170 = vsyncadd [#allocation3], 4294966784 }
  0x25   :  { %171 = dma.done.wait [#allocation6], 64  }
  0x26   :  { %172 = vsyncadd [#allocation6], 4294967232  ;;  %v38_v0 = vld [vmem:[#allocation5] sm:$0xf]  ;;  %v46_v4 = vlaneseq  ;;  %v52_v12 = vld [vmem:[#allocation2 + $0x8] sm:$0xff]  ;;  %s179_s1 = smov [#allocation7]  }
  0x27   :  { %v93_v1 = vmul.f32 -1.442695, %v38_v0  ;;  %v45_v11 = vld [vmem:[#allocation2] sm:$0xff]  ;;  %v60_v13 = vld [vmem:[#allocation2 + $0x10] sm:$0xff]  ;;  %v68_v18 = vld [vmem:[#allocation2 + $0x18] sm:$0xff]  ;;  %s83_s6 = sshll.u32 %s179_s1, 4  ;;  %s84_s6 = int_to_ptr.vmem [resolvable:$true] %s83_s6 }
  0x28   :  { %v47_v5 = vshrl.u32 %v46_v4, 7  ;;  %s147_s7 = scalar_lea.vmem %s84_s6, 128  ;;  %p152_p3 = scmp.lt.s32.totalorder %s84_s6, %s84_s6 }
  0x29   :  { %99 = vpow2.f32 %v93_v1  ;;  %p148_p2 = scmp.ne.s32.totalorder %s84_s6, %s147_s7  ;;  %p153_p4 = scmp.lt.s32.totalorder %s147_s7, %s147_s7 }
  0x2a   :  { %v48_v6 = vsub.s32 0, %v47_v5  ;;  %v55_v7 = vsub.s32 1, %v47_v5  ;;  %v63_v8 = vsub.s32 2, %v47_v5  ;;  %v71_v9 = vsub.s32 3, %v47_v5 }
  0x2b   :  { %p154_p5 = por %p153_p4, %p152_p3 }
  0x2d   :  { %p155_p6 = pnand %p154_p5, %p148_p2 }
  0x33   :  { %v100_v2 = vpop.eup %99 }
  0x34   :  { %v42_v3 = vadd.f32 1.0, %v100_v2 }
  0x36   :  { %101 = vrcp.f32 %v42_v3 }
  0x40   :  { %v102_v10 = vpop.eup %101 }
  0x41   :  { %v49_v14 = vrot.slane %v102_v10, %v48_v6  ;;  %v56_v15 = vrot.slane %v102_v10, %v55_v7  ;;  %v64_v16 = vrot.slane %v102_v10, %v63_v8  ;;  %v72_v17 = vrot.slane %v102_v10, %v71_v9 }
  0x43   :  { %v50_v19 = vmul.f32 %v49_v14, %v45_v11  ;;  %v57_v20 = vmul.f32 %v56_v15, %v52_v12  ;;  %v65_v21 = vmul.f32 %v64_v16, %v60_v13  ;;  %v73_v23 = vmul.f32 %v72_v17, %v68_v18 }
  0x45   :  { %v58_v22 = vadd.f32 %v57_v20, %v50_v19 }
  0x47   :  { %v66_v24 = vadd.f32 %v65_v21, %v58_v22 }
  0x49   :  { %v74_v25 = vadd.f32 %v73_v23, %v66_v24 }
  0x4b   :  { %v75_v26 = vmul.f32 0.25, %v74_v25 }
  0x4d   :  { %76 = vst [vmem:[#allocation7] sm:$0xff] %v75_v26 }
  0x4e   :  { %158 = shalt.err (!%p155_p6)
}
  0x4f   :  { %s159_s10 = scalar_lea.hbm %s233_s2, 128 }
  0x50   :  { %p160_p7 = scmp.ne.s32.totalorder %s233_s2, %s159_s10  ;;  %p163_p8 = scmp.lt.u32.totalorder %s159_s10, %s233_s2 }
  0x52   :  { %p165_p9 = pnand %p163_p8, %p160_p7 }
  0x54   :  { %168 = shalt.err (!%p165_p9)
}
  0x55   :  { %86 = dma.vmem_to_hbm [thread:$0]  %s84_s6, 128, %s233_s2, [#allocation4]  }
  0x56   :  { %173 = dma.done.wait [#allocation4], 128  }
  0x57   :  { %174 = vsyncadd [#allocation4], 4294967168 }
  0x58   :  { %90 = vsyncpa [#allocation3], 1 }
  0x59   :  { %91 = vsyncpa [#allocation6], 1 }
  0x5a   :  { %92 = vsyncpa [#allocation4], 1 }

</bundles_post_ra>
